<compile_context>
chip_gen: v7x
topology: tpu7x:2x2x1
jax: 0.10.0
libtpu: 0.0.40
codegen_flags: <defaults>
</compile_context>

<pallas_src>
import functools

import jax
import jax.numpy as jnp
from jax.experimental import pallas as pl
from jax.experimental.pallas import tpu as pltpu

BN_EPS = 1e-5
_HALO = 4          # >= 3 chained shift-by-1 stages; 4 keeps the row count 8-aligned


def _round_up(x, m):
    return ((x + m - 1) // m) * m


def _choose_tt(T, din_p, bn_p, dout_p, budget=10 * 2**20):
    """Pick a time-tile size whose VMEM footprint stays well under the scoped
    default on every TPU generation (incl. v5e's 16 MiB default / v7x)."""
    # double-buffered bf16 weights (constant blocks, fetched once)
    w_bytes = 2 * 2 * (din_p * 2 * bn_p + bn_p * 2 * bn_p + bn_p * 2 * dout_p)
    tt = min(512, _round_up(T, 8))
    while True:
        r = tt + 2 * _HALO
        io = 2 * (r * din_p * 2 + tt * dout_p * 4)              # dbl-buffered x / out
        interm = (r * (din_p * 2 + 8 * bn_p * 4 + 4 * bn_p * 2 + 2 * dout_p * 4)
                  + tt * dout_p * 4)                            # rough live-value bound
        if w_bytes + io + interm <= budget or tt <= 8:
            break
        tt = max(8, _round_up(tt // 2, 8))
    return tt


def _ftdnn_kernel(x_ref, w1_ref, w2_ref, w3_ref, scale_ref, bias_ref, o_ref,
                  *, bn_p, dout_p, halo, seq_len):
    """Fused 3-stage factorised TDNN on one (batch, time-tile) block.

    x_ref      : (1, 1, R, Din_p)  bf16, R = TT + 2*halo rows (halo = neighbours / zeros)
    wN_ref     : (Cin_p, 2*Cout_p) bf16, tap-0 | tap-1 concatenated on lanes
    scale/bias : (1, Dout_p) f32 folded BatchNorm (inference)
    o_ref      : (1, TT, Dout_p)   f32
    """
    tt = o_ref.shape[1]
    R = x_ref.shape[2]
    x = x_ref[0, 0]                                   # (R, Din_p) bf16

    # Global time index of every row in this tile.  Rows outside [0, seq_len)
    # are exactly the rows each Conv1d's zero padding would occupy, so they are
    # re-zeroed between stages (PyTorch pads every conv's own input).
    r_idx = jax.lax.broadcasted_iota(jnp.int32, (R, 1), 0)
    g_idx = pl.program_id(1) * tt + r_idx - halo
    in_seq = jnp.logical_and(g_idx >= 0, g_idx < seq_len)       # (R, 1) bool

    def factor(h, w_ref, cout):
        # one aligned MXU matmul covering both taps, f32 accumulation
        ab = jnp.dot(h, w_ref[...], preferred_element_type=jnp.float32)
        a = ab[:, :cout]                              # x[t] @ W0.T -> consumed at t+1
        b = ab[:, cout:]                              # x[t] @ W1.T -> consumed at t-1
        z = jnp.zeros((1, cout), jnp.float32)
        a_prev = jnp.concatenate([z, a[:-1, :]], axis=0)   # A[t-1], row 0 padded
        b_next = jnp.concatenate([b[1:, :], z], axis=0)    # B[t+1], last row padded
        return a_prev + b_next

    h1 = factor(x, w1_ref, bn_p)
    h1 = jnp.where(in_seq, h1, 0.0).astype(jnp.bfloat16)   # per-stage zero padding
    h2 = factor(h1, w2_ref, bn_p)
    h2 = jnp.where(in_seq, h2, 0.0).astype(jnp.bfloat16)
    h3 = factor(h2, w3_ref, dout_p)                   # (R, Dout_p) f32

    # keep only the TT rows this tile owns, then ReLU + folded BatchNorm
    y = h3[halo:halo + tt, :]
    y = jnp.maximum(y, 0.0)
    y = y * scale_ref[...] + bias_ref[...]
    o_ref[0] = y.astype(o_ref.dtype)


@functools.partial(jax.jit, static_argnames=("tile_t",))
def ftdnn_layer(x, w1, w2, w3, gamma, beta, run_mean, run_var, tile_t=None):
    """x: (B, T, in_dim) f32; wN: conv weights (out_ch, in_ch, 2) PyTorch layout."""
    B, T, Din = x.shape
    Bn = w1.shape[0]
    Dout = w3.shape[0]

    din_p = _round_up(Din, 128)
    bn_p = _round_up(Bn, 128)
    dout_p = _round_up(Dout, 128)

    if tile_t is None:
        tt = _choose_tt(T, din_p, bn_p, dout_p)
    else:
        tt = max(8, _round_up(int(tile_t), 8))
    tt = min(tt, _round_up(T, 8))
    nt = (T + tt - 1) // tt
    t_pad = nt * tt
    R = tt + 2 * _HALO

    # ---- weight prep: transpose, zero-pad channels, fuse taps, bf16 ----
    def pack_w(w, cin_p, cout_p):
        wa = jnp.pad(w[:, :, 0].T, ((0, cin_p - w.shape[1]), (0, cout_p - w.shape[0])))
        wb = jnp.pad(w[:, :, 1].T, ((0, cin_p - w.shape[1]), (0, cout_p - w.shape[0])))
        return jnp.concatenate([wa, wb], axis=1).astype(jnp.bfloat16)

    w1p = pack_w(w1, din_p, bn_p)       # (Din_p, 2*Bn_p)
    w2p = pack_w(w2, bn_p, bn_p)        # (Bn_p,  2*Bn_p)
    w3p = pack_w(w3, bn_p, dout_p)      # (Bn_p,  2*Dout_p)

    # ---- fold BatchNorm (inference) into scale / bias ----
    scale = gamma * jax.lax.rsqrt(run_var + BN_EPS)
    bias = beta - run_mean * scale
    scale_p = jnp.pad(scale, (0, dout_p - Dout)).reshape(1, dout_p).astype(jnp.float32)
    bias_p = jnp.pad(bias, (0, dout_p - Dout)).reshape(1, dout_p).astype(jnp.float32)

    # ---- activations: bf16, pad channels to lanes, pad time to tiles + halo ----
    xb = jnp.pad(x.astype(jnp.bfloat16),
                 ((0, 0), (_HALO, t_pad - T + _HALO), (0, din_p - Din)))
    # overlapping time tiles (B, NT, TT + 2*HALO, Din_p); halo duplication is tiny
    x_tiles = jnp.stack([xb[:, n * tt: n * tt + R, :] for n in range(nt)], axis=1)

    grid_spec = pltpu.PrefetchScalarGridSpec(
        num_scalar_prefetch=0,
        grid=(B, nt),
        in_specs=[
            pl.BlockSpec((1, 1, R, din_p), lambda b, n: (b, n, 0, 0)),
            pl.BlockSpec((din_p, 2 * bn_p), lambda b, n: (0, 0)),
            pl.BlockSpec((bn_p, 2 * bn_p), lambda b, n: (0, 0)),
            pl.BlockSpec((bn_p, 2 * dout_p), lambda b, n: (0, 0)),
            pl.BlockSpec((1, dout_p), lambda b, n: (0, 0)),
            pl.BlockSpec((1, dout_p), lambda b, n: (0, 0)),
        ],
        out_specs=pl.BlockSpec((1, tt, dout_p), lambda b, n: (b, n, 0)),
    )

    out = pl.pallas_call(
        functools.partial(_ftdnn_kernel, bn_p=bn_p, dout_p=dout_p,
                          halo=_HALO, seq_len=T),
        out_shape=jax.ShapeDtypeStruct((B, t_pad, dout_p), jnp.float32),
        grid_spec=grid_spec,
        compiler_params=pltpu.CompilerParams(
            dimension_semantics=("parallel", "parallel")),
    )(x_tiles, w1p, w2p, w3p, scale_p, bias_p)

    return out[:, :T, :Dout]


def ftdnn_layer_ref(x, w1, w2, w3, gamma, beta, run_mean, run_var):
    """Pure-JAX reference with PyTorch semantics, mirroring the kernel's
    bf16-input / f32-accumulate numerics."""
    def conv_k2_d2_p1(h, w):            # h: (B,T,Cin) f32 (bf16-rounded), w: (Cout,Cin,2)
        wa = w[:, :, 0].T.astype(jnp.bfloat16).astype(jnp.float32)
        wb = w[:, :, 1].T.astype(jnp.bfloat16).astype(jnp.float32)
        a = h @ wa
        b = h @ wb
        z = jnp.zeros_like(a[:, :1, :])
        a_prev = jnp.concatenate([z, a[:, :-1, :]], axis=1)   # A[t-1]
        b_next = jnp.concatenate([b[:, 1:, :], z], axis=1)    # B[t+1]
        return a_prev + b_next

    h = x.astype(jnp.bfloat16).astype(jnp.float32)
    h = conv_k2_d2_p1(h, w1)
    h = h.astype(jnp.bfloat16).astype(jnp.float32)
    h = conv_k2_d2_p1(h, w2)
    h = h.astype(jnp.bfloat16).astype(jnp.float32)
    h = conv_k2_d2_p1(h, w3)
    h = jnp.maximum(h, 0.0)
    scale = gamma * jax.lax.rsqrt(run_var + BN_EPS)
    bias = beta - run_mean * scale
    return h * scale + bias


if __name__ == "__main__":
    # Small shapes consistent with forward(): x is (batch, seq_len, in_dim).
    B, T, IN_DIM, BOTTLENECK, OUT_DIM = 2, 8, 32, 16, 32

    key = jax.random.PRNGKey(0)
    kx, k1, k2, k3, kb1, kb2, kb3, kb4, kx2 = jax.random.split(key, 9)

    x = jax.random.normal(kx, (B, T, IN_DIM), dtype=jnp.float32)

    # factor1 / factor2: normal(0, (in_ch * kernel)^-0.5) like reset_parameters()
    w1 = jax.random.normal(k1, (BOTTLENECK, IN_DIM, 2),
                           dtype=jnp.float32) * (IN_DIM * 2) ** -0.5
    w2 = jax.random.normal(k2, (BOTTLENECK, BOTTLENECK, 2),
                           dtype=jnp.float32) * (BOTTLENECK * 2) ** -0.5
    bound = (BOTTLENECK * 2) ** -0.5
    w3 = jax.random.uniform(k3, (OUT_DIM, BOTTLENECK, 2),
                            dtype=jnp.float32, minval=-bound, maxval=bound)

    # BatchNorm1d parameters / running stats (non-trivial to exercise the fold)
    gamma = jax.random.uniform(kb1, (OUT_DIM,), jnp.float32, 0.5, 1.5)
    beta = 0.1 * jax.random.normal(kb2, (OUT_DIM,), jnp.float32)
    run_mean = 0.1 * jax.random.normal(kb3, (OUT_DIM,), jnp.float32)
    run_var = jax.random.uniform(kb4, (OUT_DIM,), jnp.float32, 0.5, 1.5)

    out = jax.block_until_ready(
        ftdnn_layer(x, w1, w2, w3, gamma, beta, run_mean, run_var))
    ref = ftdnn_layer_ref(x, w1, w2, w3, gamma, beta, run_mean, run_var)
    assert out.shape == (B, T, OUT_DIM)
    assert jnp.allclose(out, ref, rtol=2e-3, atol=2e-3), "mismatch vs reference"

    # second, multi-tile check: exercises halo handling + per-stage zero padding
    T2 = 40
    x2 = jax.random.normal(kx2, (B, T2, IN_DIM), dtype=jnp.float32)
    out2 = jax.block_until_ready(
        ftdnn_layer(x2, w1, w2, w3, gamma, beta, run_mean, run_var, tile_t=8))
    ref2 = ftdnn_layer_ref(x2, w1, w2, w3, gamma, beta, run_mean, run_var)
    assert out2.shape == (B, T2, OUT_DIM)
    assert jnp.allclose(out2, ref2, rtol=2e-3, atol=2e-3), "multi-tile mismatch"

    print("KERNEL_OK")
</pallas_src>

<mosaic_0001>
module attributes {stable_mosaic.version = 11 : i64} {
  func.func @_ftdnn_kernel(%arg0: i32, %arg1: i32, %arg2: memref<1x1x16x128xbf16, #tpu.memory_space<vmem>>, %arg3: memref<128x256xbf16, #tpu.memory_space<vmem>>, %arg4: memref<128x256xbf16, #tpu.memory_space<vmem>>, %arg5: memref<128x256xbf16, #tpu.memory_space<vmem>>, %arg6: memref<1x128xf32, #tpu.memory_space<vmem>>, %arg7: memref<1x128xf32, #tpu.memory_space<vmem>>, %arg8: memref<1x8x128xf32, #tpu.memory_space<vmem>>) attributes {dimension_semantics = [#tpu.dimension_semantics<parallel>, #tpu.dimension_semantics<parallel>], iteration_bounds = array<i64: 2, 1>, scalar_prefetch = 0 : i64, scratch_operands = 0 : i64, tpu.core_type = #tpu.core_type<tc>, window_params = [{transform_indices = @transform_0, window_bounds = array<i64: 1, 1, 16, 128>}, {pipeline_mode = #tpu.pipeline_mode<synchronous>, transform_indices = @transform_1, window_bounds = array<i64: 128, 256>}, {pipeline_mode = #tpu.pipeline_mode<synchronous>, transform_indices = @transform_2, window_bounds = array<i64: 128, 256>}, {pipeline_mode = #tpu.pipeline_mode<synchronous>, transform_indices = @transform_3, window_bounds = array<i64: 128, 256>}, {pipeline_mode = #tpu.pipeline_mode<synchronous>, transform_indices = @transform_4, window_bounds = array<i64: 1, 128>}, {pipeline_mode = #tpu.pipeline_mode<synchronous>, transform_indices = @transform_5, window_bounds = array<i64: 1, 128>}, {transform_indices = @transform_6, window_bounds = array<i64: 1, 8, 128>}]} {
    %c0 = arith.constant 0 : index
    %c0_0 = arith.constant 0 : index
    %c0_1 = arith.constant 0 : index
    %c0_2 = arith.constant 0 : index
    %0 = vector.load %arg2[%c0, %c0_0, %c0_1, %c0_2] : memref<1x1x16x128xbf16, #tpu.memory_space<vmem>>, vector<1x1x16x128xbf16>
    %1 = vector.shape_cast %0 : vector<1x1x16x128xbf16> to vector<16x128xbf16>
    %2 = tpu.iota {dimensions = array<i32: 0>} : vector<16x1xi32>
    %c8_i32 = arith.constant 8 : i32
    %3 = arith.muli %arg1, %c8_i32 : i32
    %4 = vector.broadcast %3 : i32 to vector<16x1xi32>
    %5 = arith.addi %4, %2 : vector<16x1xi32>
    %c4_i32 = arith.constant 4 : i32
    %6 = vector.broadcast %c4_i32 : i32 to vector<16x1xi32>
    %7 = arith.subi %5, %6 : vector<16x1xi32>
    %c0_i32 = arith.constant 0 : i32
    %8 = vector.broadcast %c0_i32 : i32 to vector<16x1xi32>
    %9 = arith.cmpi sge, %7, %8 : vector<16x1xi32>
    %c8_i32_3 = arith.constant 8 : i32
    %10 = vector.broadcast %c8_i32_3 : i32 to vector<16x1xi32>
    %11 = arith.cmpi slt, %7, %10 : vector<16x1xi32>
    %12 = arith.andi %9, %11 : vector<16x1xi1>
    %c0_4 = arith.constant 0 : index
    %c0_5 = arith.constant 0 : index
    %13 = vector.load %arg3[%c0_4, %c0_5] : memref<128x256xbf16, #tpu.memory_space<vmem>>, vector<128x256xbf16>
    %cst = arith.constant dense<0.000000e+00> : vector<16x256xf32>
    %14 = tpu.matmul %1, %13, %cst {dimension_numbers = #tpu.dot_dimension_numbers<[1], [0], [0], [1], [0, 0, 1, 1], [], []>} : vector<16x128xbf16>, vector<128x256xbf16>, vector<16x256xf32> -> vector<16x256xf32>
    %15 = vector.extract_strided_slice %14 {offsets = [0, 0], sizes = [16, 128], strides = [1, 1]} : vector<16x256xf32> to vector<16x128xf32>
    %16 = vector.extract_strided_slice %14 {offsets = [0, 128], sizes = [16, 128], strides = [1, 1]} : vector<16x256xf32> to vector<16x128xf32>
    %cst_6 = arith.constant 0.000000e+00 : f32
    %17 = vector.broadcast %cst_6 : f32 to vector<1x128xf32>
    %18 = vector.extract_strided_slice %15 {offsets = [0, 0], sizes = [15, 128], strides = [1, 1]} : vector<16x128xf32> to vector<15x128xf32>
    %19 = tpu.concatenate %17, %18 in 0 : vector<1x128xf32>, vector<15x128xf32> -> vector<16x128xf32>
    %20 = vector.extract_strided_slice %16 {offsets = [1, 0], sizes = [15, 128], strides = [1, 1]} : vector<16x128xf32> to vector<15x128xf32>
    %21 = tpu.concatenate %20, %17 in 0 : vector<15x128xf32>, vector<1x128xf32> -> vector<16x128xf32>
    %22 = arith.addf %19, %21 : vector<16x128xf32>
    %cst_7 = arith.constant 0.000000e+00 : f32
    %23 = vector.shape_cast %12 : vector<16x1xi1> to vector<16x1xi1>
    %24 = vector.broadcast %23 : vector<16x1xi1> to vector<16x128xi1>
    %25 = vector.broadcast %cst_7 : f32 to vector<16x128xf32>
    %26 = arith.select %24, %22, %25 : vector<16x128xi1>, vector<16x128xf32>
    %27 = arith.truncf %26 : vector<16x128xf32> to vector<16x128xbf16>
    %c0_8 = arith.constant 0 : index
    %c0_9 = arith.constant 0 : index
    %28 = vector.load %arg4[%c0_8, %c0_9] : memref<128x256xbf16, #tpu.memory_space<vmem>>, vector<128x256xbf16>
    %cst_10 = arith.constant dense<0.000000e+00> : vector<16x256xf32>
    %29 = tpu.matmul %27, %28, %cst_10 {dimension_numbers = #tpu.dot_dimension_numbers<[1], [0], [0], [1], [0, 0, 1, 1], [], []>} : vector<16x128xbf16>, vector<128x256xbf16>, vector<16x256xf32> -> vector<16x256xf32>
    %30 = vector.extract_strided_slice %29 {offsets = [0, 0], sizes = [16, 128], strides = [1, 1]} : vector<16x256xf32> to vector<16x128xf32>
    %31 = vector.extract_strided_slice %29 {offsets = [0, 128], sizes = [16, 128], strides = [1, 1]} : vector<16x256xf32> to vector<16x128xf32>
    %cst_11 = arith.constant 0.000000e+00 : f32
    %32 = vector.broadcast %cst_11 : f32 to vector<1x128xf32>
    %33 = vector.extract_strided_slice %30 {offsets = [0, 0], sizes = [15, 128], strides = [1, 1]} : vector<16x128xf32> to vector<15x128xf32>
    %34 = tpu.concatenate %32, %33 in 0 : vector<1x128xf32>, vector<15x128xf32> -> vector<16x128xf32>
    %35 = vector.extract_strided_slice %31 {offsets = [1, 0], sizes = [15, 128], strides = [1, 1]} : vector<16x128xf32> to vector<15x128xf32>
    %36 = tpu.concatenate %35, %32 in 0 : vector<15x128xf32>, vector<1x128xf32> -> vector<16x128xf32>
    %37 = arith.addf %34, %36 : vector<16x128xf32>
    %cst_12 = arith.constant 0.000000e+00 : f32
    %38 = vector.shape_cast %12 : vector<16x1xi1> to vector<16x1xi1>
    %39 = vector.broadcast %38 : vector<16x1xi1> to vector<16x128xi1>
    %40 = vector.broadcast %cst_12 : f32 to vector<16x128xf32>
    %41 = arith.select %39, %37, %40 : vector<16x128xi1>, vector<16x128xf32>
    %42 = arith.truncf %41 : vector<16x128xf32> to vector<16x128xbf16>
    %c0_13 = arith.constant 0 : index
    %c0_14 = arith.constant 0 : index
    %43 = vector.load %arg5[%c0_13, %c0_14] : memref<128x256xbf16, #tpu.memory_space<vmem>>, vector<128x256xbf16>
    %cst_15 = arith.constant dense<0.000000e+00> : vector<16x256xf32>
    %44 = tpu.matmul %42, %43, %cst_15 {dimension_numbers = #tpu.dot_dimension_numbers<[1], [0], [0], [1], [0, 0, 1, 1], [], []>} : vector<16x128xbf16>, vector<128x256xbf16>, vector<16x256xf32> -> vector<16x256xf32>
    %45 = vector.extract_strided_slice %44 {offsets = [0, 0], sizes = [16, 128], strides = [1, 1]} : vector<16x256xf32> to vector<16x128xf32>
    %46 = vector.extract_strided_slice %44 {offsets = [0, 128], sizes = [16, 128], strides = [1, 1]} : vector<16x256xf32> to vector<16x128xf32>
    %cst_16 = arith.constant 0.000000e+00 : f32
    %47 = vector.broadcast %cst_16 : f32 to vector<1x128xf32>
    %48 = vector.extract_strided_slice %45 {offsets = [0, 0], sizes = [15, 128], strides = [1, 1]} : vector<16x128xf32> to vector<15x128xf32>
    %49 = tpu.concatenate %47, %48 in 0 : vector<1x128xf32>, vector<15x128xf32> -> vector<16x128xf32>
    %50 = vector.extract_strided_slice %46 {offsets = [1, 0], sizes = [15, 128], strides = [1, 1]} : vector<16x128xf32> to vector<15x128xf32>
    %51 = tpu.concatenate %50, %47 in 0 : vector<15x128xf32>, vector<1x128xf32> -> vector<16x128xf32>
    %52 = arith.addf %49, %51 : vector<16x128xf32>
    %53 = vector.extract_strided_slice %52 {offsets = [4, 0], sizes = [8, 128], strides = [1, 1]} : vector<16x128xf32> to vector<8x128xf32>
    %cst_17 = arith.constant 0.000000e+00 : f32
    %54 = vector.broadcast %cst_17 : f32 to vector<8x128xf32>
    %55 = arith.maximumf %53, %54 : vector<8x128xf32>
    %c0_18 = arith.constant 0 : index
    %c0_19 = arith.constant 0 : index
    %56 = vector.load %arg6[%c0_18, %c0_19] : memref<1x128xf32, #tpu.memory_space<vmem>>, vector<1x128xf32>
    %57 = vector.broadcast %56 : vector<1x128xf32> to vector<8x128xf32>
    %58 = arith.mulf %55, %57 : vector<8x128xf32>
    %c0_20 = arith.constant 0 : index
    %c0_21 = arith.constant 0 : index
    %59 = vector.load %arg7[%c0_20, %c0_21] : memref<1x128xf32, #tpu.memory_space<vmem>>, vector<1x128xf32>
    %60 = vector.broadcast %59 : vector<1x128xf32> to vector<8x128xf32>
    %61 = arith.addf %58, %60 : vector<8x128xf32>
    %c0_22 = arith.constant 0 : index
    %c0_23 = arith.constant 0 : index
    %c0_24 = arith.constant 0 : index
    %62 = vector.load %arg8[%c0_22, %c0_23, %c0_24] : memref<1x8x128xf32, #tpu.memory_space<vmem>>, vector<1x8x128xf32>
    %63 = vector.shape_cast %62 : vector<1x8x128xf32> to vector<8x128xf32>
    %64 = vector.shape_cast %61 : vector<8x128xf32> to vector<1x8x128xf32>
    tpu.vector_store %arg8[%c0_22, %c0_23, %c0_24], %64 {strides = array<i32>} : memref<1x8x128xf32, #tpu.memory_space<vmem>>, vector<1x8x128xf32>,
    return
  }
  func.func @transform_0(%arg0: i32, %arg1: i32) -> (i32, i32, i32, i32) {
    %c0_i32 = arith.constant 0 : i32
    %c0_i32_0 = arith.constant 0 : i32
    %c0_i32_1 = arith.constant 0 : i32
    return %arg0, %arg1, %c0_i32, %c0_i32_0 : i32, i32, i32, i32
  }
  func.func @transform_1(%arg0: i32, %arg1: i32) -> (i32, i32) {
    %c0_i32 = arith.constant 0 : i32
    %c0_i32_0 = arith.constant 0 : i32
    %c0_i32_1 = arith.constant 0 : i32
    return %c0_i32, %c0_i32_0 : i32, i32
  }
  func.func @transform_2(%arg0: i32, %arg1: i32) -> (i32, i32) {
    %c0_i32 = arith.constant 0 : i32
    %c0_i32_0 = arith.constant 0 : i32
    %c0_i32_1 = arith.constant 0 : i32
    return %c0_i32, %c0_i32_0 : i32, i32
  }
  func.func @transform_3(%arg0: i32, %arg1: i32) -> (i32, i32) {
    %c0_i32 = arith.constant 0 : i32
    %c0_i32_0 = arith.constant 0 : i32
    %c0_i32_1 = arith.constant 0 : i32
    return %c0_i32, %c0_i32_0 : i32, i32
  }
  func.func @transform_4(%arg0: i32, %arg1: i32) -> (i32, i32) {
    %c0_i32 = arith.constant 0 : i32
    %c0_i32_0 = arith.constant 0 : i32
    %c0_i32_1 = arith.constant 0 : i32
    return %c0_i32, %c0_i32_0 : i32, i32
  }
  func.func @transform_5(%arg0: i32, %arg1: i32) -> (i32, i32) {
    %c0_i32 = arith.constant 0 : i32
    %c0_i32_0 = arith.constant 0 : i32
    %c0_i32_1 = arith.constant 0 : i32
    return %c0_i32, %c0_i32_0 : i32, i32
  }
  func.func @transform_6(%arg0: i32, %arg1: i32) -> (i32, i32, i32) {
    %c0_i32 = arith.constant 0 : i32
    %c0_i32_0 = arith.constant 0 : i32
    return %arg0, %arg1, %c0_i32 : i32, i32, i32
  }
}

</mosaic_0001>

<bundles_post_ra>
// kernel: ftdnn_layer.1
= control target key start
LH: loop header
LB: loop body
LE: loop exit
PB: predicated region body
PF: predicated region fallthrough
CT: control target
= control target key end

     0   :  { %11 = vsyncpa [#allocation3], 0  ;;  %s1502_s0 = inlined_call_operand.vmem [shape: bf16[2,1,16,128], index: 0, kind: input, shape index: {}]   ;;  %s1503_s1 = inlined_call_operand.vmem [shape: bf16[128,256], index: 1, kind: input, shape index: {}]   ;;  %s1504_s2 = inlined_call_operand.vmem [shape: bf16[128,256], index: 2, kind: input, shape index: {}]   ;;  %s1505_s3 = inlined_call_operand.vmem [shape: bf16[128,256], index: 3, kind: input, shape index: {}]   ;;  %s1506_s4 = inlined_call_operand.vmem [shape: f32[1,128], index: 4, kind: input, shape index: {}]   ;;  %s1507_s5 = inlined_call_operand.vmem [shape: f32[1,128], index: 5, kind: input, shape index: {}]   ;;  %s1508_s6 = inlined_call_operand.hbm [shape: f32[2,8,128], index: 6, kind: output, shape index: {}]  }
   0x1   :  { %13 = vsyncpa [#allocation3 + $0x1], 0  ;;  %s1217_s21 = smov 0   ;;  %s1219_s22 = smov 0  }
   0x2   :  { %s1221_s23 = smov 0   ;;  %s1223_s24 = smov 0  }
   0x3   :  { %s1225_s25 = smov 0   ;;  %s1227_s26 = smov 0  }
   0x4 LB: > { %s899_s27 = sadd.s32 4294967295, %s1178_s26   ;;  %s900_s28 = sadd.s32 4294967294, %s1178_s26   ;;  %s1178_s26 = sphi %s1227_s26, %s19_s26   ;;  %s1174_s25 = sphi %s1225_s25, %s1517_s25   ;;  %s1170_s24 = sphi %s1223_s24, %s1516_s24   ;;  %s1166_s23 = sphi %s1221_s23, %s1515_s23   ;;  %s1162_s22 = sphi %s1219_s22, %s1514_s22   ;;  %s1158_s21 = sphi %s1217_s21, %s1513_s21  }
   0x5   : > { %s31_s29 = sadd.s32 1, %s1174_s25  ;;  %s173_s30 = sadd.s32 1, %s1166_s23 }
   0x6   : > { %p33_p0 = scmp.ge.s32.totalorder %s31_s29, 2  ;;  %p183_p1 = scmp.ne.s32.totalorder %s1166_s23, %s1162_s22 }
   0x7   : > { %p184_p2 = scmp.eq.s32.totalorder %s899_s27, 1  ;;  %p189_p3 = scmp.ne.s32.totalorder %s1162_s22, %s1158_s21 }
   0x8   : > { %s1519_s29 = smov (%p33_p0, %s31_s29), 0  ;;  %p190_p5 = scmp.eq.s32.totalorder %s900_s28, 1 }
   0x9   : > { %p1257_p4 = por %p184_p2, %p183_p1  ;;  %s168_s8 = ssub.s32 %s1174_s25, %s1519_s29 }
   0xa   : > { %p903_p6 = scmp.ge.s32.totalorder %s1178_s26, 1  ;;  %p171_p7 = scmp.eq.s32.totalorder %s168_s8, 0 }
   0xb   : > { %p1264_p8 = por %p190_p5, %p189_p3  ;;  %p235_p9 = scmp.lt.s32.totalorder %s1178_s26, 3 }
   0xc   : > { %s1270_s10 = scalar_select %p171_p7, %s1166_s23, %s173_s30  }
   0xd   : > { %p236_p10 = pnand %p903_p6, %p235_p9 }
   0xe   : > { %v1027_v0 = vld [vmem:[%s1503_s1 + $0x4] ss:$8 sps:$4 sm:$0xff] (!%p236_p10)   ;;  %p269_p11 = scmp.lt.s32.totalorder (!%p236_p10), %s1170_s24, 1  ;;  %v1029_v1 = vld [vmem:[%s1503_s1] ss:$8 sps:$4 sm:$0xff] (!%p236_p10)   ;;  %v1180_v2 = vmov (!%p236_p10), 0   ;;  %v281_v46 = vlaneseq (!%p236_p10) }
   0xf   : > { %239 = sbr.rel (%p236_p10) target bundleno = 732 (0x2dc), region = 44  ;;  %430 = vmatprep.mubr.bf16.mxu0 (!%p236_p10), %v1180_v2  ;;  %596 = vmatprep.mubr.bf16.mxu1 (!%p236_p10), %v1180_v2  ;;  %v1030_v3 = vld [vmem:[%s1503_s1 + $0x14] ss:$8 sps:$4 sm:$0xff] (!%p236_p10)   ;;  %v1032_v4 = vld [vmem:[%s1503_s1 + $0x10] ss:$8 sps:$4 sm:$0xff] (!%p236_p10)   ;;  %vm443_vm0 = vcmask (!%p236_p10), 1040384  }
  0x10   : > { %398 = vmatprep.subr.bf16.mxu0 (!%p236_p10), %v1027_v0  ;;  %v1033_v5 = vld [vmem:[%s1503_s1 + $0x24] ss:$8 sps:$4 sm:$0xff] (!%p236_p10)   ;;  %v1035_v6 = vld [vmem:[%s1503_s1 + $0x20] ss:$8 sps:$4 sm:$0xff] (!%p236_p10)   ;;  %v1036_v7 = vld [vmem:[%s1503_s1 + $0x34] ss:$8 sps:$4 sm:$0xff] (!%p236_p10)  }
  0x11   : > { %399 = vmatpush1.bf16.msra.mxu0 (!%p236_p10), %v1029_v1  ;;  %v1038_v8 = vld [vmem:[%s1503_s1 + $0x30] ss:$8 sps:$4 sm:$0xff] (!%p236_p10)   ;;  %v1039_v9 = vld [vmem:[%s1503_s1 + $0x44] ss:$8 sps:$4 sm:$0xff] (!%p236_p10)   ;;  %v1054_v11 = vld [vmem:[%s1504_s2] ss:$8 sps:$4 sm:$0xff] (!%p236_p10)  }
  0x12   : > { %400 = vmatprep.subr.bf16.mxu0 (!%p236_p10), %v1030_v3  ;;  %v1052_v10 = vld [vmem:[%s1504_s2 + $0x4] ss:$8 sps:$4 sm:$0xff] (!%p236_p10)   ;;  %v1055_v12 = vld [vmem:[%s1504_s2 + $0x14] ss:$8 sps:$4 sm:$0xff] (!%p236_p10)   ;;  %v1041_v13 = vld [vmem:[%s1503_s1 + $0x40] ss:$8 sps:$4 sm:$0xff] (!%p236_p10)  }
  0x13   : > { %564 = vmatprep.subr.bf16.mxu1 (!%p236_p10), %v1052_v10  ;;  %v1057_v14 = vld [vmem:[%s1504_s2 + $0x10] ss:$8 sps:$4 sm:$0xff] (!%p236_p10)   ;;  %v1042_v15 = vld [vmem:[%s1503_s1 + $0x54] ss:$8 sps:$4 sm:$0xff] (!%p236_p10)   ;;  %v1058_v16 = vld [vmem:[%s1504_s2 + $0x24] ss:$8 sps:$4 sm:$0xff] (!%p236_p10)  }
  0x14   : > { %565 = vmatpush1.bf16.msra.mxu1 (!%p236_p10), %v1054_v11  ;;  %v1044_v17 = vld [vmem:[%s1503_s1 + $0x50] ss:$8 sps:$4 sm:$0xff] (!%p236_p10)   ;;  %v1045_v18 = vld [vmem:[%s1503_s1 + $0x64] ss:$8 sps:$4 sm:$0xff] (!%p236_p10)   ;;  %v1060_v19 = vld [vmem:[%s1504_s2 + $0x20] ss:$8 sps:$4 sm:$0xff] (!%p236_p10)  }
  0x15   : > { %401 = vmatpush1.bf16.msra.mxu0 (!%p236_p10), %v1032_v4  ;;  %566 = vmatprep.subr.bf16.mxu1 (!%p236_p10), %v1055_v12  ;;  %v1061_v20 = vld [vmem:[%s1504_s2 + $0x34] ss:$8 sps:$4 sm:$0xff] (!%p236_p10)   ;;  %v1047_v21 = vld [vmem:[%s1503_s1 + $0x60] ss:$8 sps:$4 sm:$0xff] (!%p236_p10)   ;;  %v1063_v22 = vld [vmem:[%s1504_s2 + $0x30] ss:$8 sps:$4 sm:$0xff] (!%p236_p10)  }
  0x16   : > { %s270_s17 = scalar_select %p269_p11, %s1170_s24, 1  ;;  %402 = vmatprep.subr.bf16.mxu0 %v1033_v5  ;;  %v1048_v23 = vld [vmem:[%s1503_s1 + $0x74] ss:$8 sps:$4 sm:$0xff]   ;;  %v1064_v24 = vld [vmem:[%s1504_s2 + $0x44] ss:$8 sps:$4 sm:$0xff]   ;;  %v282_v47 = vshrl.u32 %v281_v46, 7 }
  0x17   : > { %v1050_v25 = vld [vmem:[%s1503_s1 + $0x70] ss:$8 sps:$4 sm:$0xff]   ;;  %v1066_v26 = vld [vmem:[%s1504_s2 + $0x40] ss:$8 sps:$4 sm:$0xff]   ;;  %v1067_v27 = vld [vmem:[%s1504_s2 + $0x54] ss:$8 sps:$4 sm:$0xff]  }
  0x18   : > { %s970_s28 = sshll.u32 %s270_s17, 3  ;;  %567 = vmatpush1.bf16.msra.mxu1 %v1057_v14  ;;  %v1069_v29 = vld [vmem:[%s1504_s2 + $0x50] ss:$8 sps:$4 sm:$0xff]   ;;  %v1070_v30 = vld [vmem:[%s1504_s2 + $0x64] ss:$8 sps:$4 sm:$0xff]   ;;  %v283_v48 = vadd.s32 8, %v282_v47 }
  0x19   : > { %s1298_s15 = scalar_lea.vmem %s1502_s0, %s970_s28  ;;  %403 = vmatpush1.bf16.msra.mxu0 %v1035_v6  ;;  %568 = vmatprep.subr.bf16.mxu1 %v1058_v16  ;;  %v1072_v31 = vld [vmem:[%s1504_s2 + $0x60] ss:$8 sps:$4 sm:$0xff]   ;;  %v1073_v32 = vld [vmem:[%s1504_s2 + $0x74] ss:$8 sps:$4 sm:$0xff]   ;;  %v1075_v33 = vld [vmem:[%s1504_s2 + $0x70] ss:$8 sps:$4 sm:$0xff]  }
  0x1a   : > { %404 = vmatprep.subr.bf16.mxu0 %v1036_v7  ;;  %v1051_v28 = vld [vmem:[%s1298_s15] sm:$0xff]   ;;  %v1081_v36 = vld [vmem:[%s1505_s3 + $0x14] ss:$8 sps:$4 sm:$0xff]   ;;  %v1079_v37 = vld [vmem:[%s1505_s3 + $0x10] ss:$8 sps:$4 sm:$0xff]   ;;  %v907_v51 = vadd.s32 4294967292, %v282_v47 }
  0x1b   : > { %v1076_v34 = vld [vmem:[%s1505_s3] ss:$8 sps:$4 sm:$0xff]   ;;  %v1078_v35 = vld [vmem:[%s1505_s3 + $0x4] ss:$8 sps:$4 sm:$0xff]   ;;  %v1087_v40 = vld [vmem:[%s1505_s3 + $0x34] ss:$8 sps:$4 sm:$0xff]  }
  0x1c   : > { %569 = vmatpush1.bf16.msra.mxu1 %v1060_v19  ;;  %v1084_v38 = vld [vmem:[%s1505_s3 + $0x24] ss:$8 sps:$4 sm:$0xff]   ;;  %v1082_v39 = vld [vmem:[%s1505_s3 + $0x20] ss:$8 sps:$4 sm:$0xff]   ;;  %v1085_v41 = vld [vmem:[%s1505_s3 + $0x30] ss:$8 sps:$4 sm:$0xff]  }
  0x1d   : > { %405 = vmatpush1.bf16.msra.mxu0 %v1038_v8  ;;  %570 = vmatprep.subr.bf16.mxu1 %v1061_v20  ;;  %v1090_v42 = vld [vmem:[%s1505_s3 + $0x44] ss:$8 sps:$4 sm:$0xff]   ;;  %v1088_v43 = vld [vmem:[%s1505_s3 + $0x40] ss:$8 sps:$4 sm:$0xff]   ;;  %v1093_v44 = vld [vmem:[%s1505_s3 + $0x54] ss:$8 sps:$4 sm:$0xff]  }
  0x1e   : > { %406 = vmatprep.subr.bf16.mxu0 %v1039_v9  ;;  %v1091_v45 = vld [vmem:[%s1505_s3 + $0x50] ss:$8 sps:$4 sm:$0xff]   ;;  %v908_v52 = vadd.s32 4294967292, %v283_v48  ;;  %vm452_vm1 = vcmask 1046528   ;;  %vm290_vm2 = vcmp.ge.s32.totalorder %v907_v51, 0  ;;  %s266_s18 = sand.u32 1, %s1162_s22  }
  0x1f   : > { %v1096_v3 = vld [vmem:[%s1505_s3 + $0x64] ss:$8 sps:$4 sm:$0xff]   ;;  %v1094_v4 = vld [vmem:[%s1505_s3 + $0x60] ss:$8 sps:$4 sm:$0xff]   ;;  %v1099_v5 = vld [vmem:[%s1505_s3 + $0x74] ss:$8 sps:$4 sm:$0xff]  }
  0x20   : > { %571 = vmatpush1.bf16.msra.mxu1 %v1063_v22  ;;  %vm293_vm3 = vcmp.lt.s32.totalorder %v908_v52, 8  ;;  %v1097_v6 = vld [vmem:[%s1505_s3 + $0x70] ss:$8 sps:$4 sm:$0xff]   ;;  %s904_s17 = sshll.u32 %s266_s18, 3  ;;  %s967_s15 = sshll.u32 %s1170_s24, 7 }
  0x21   : > { %407 = vmatpush1.bf16.msra.mxu0 %v1041_v13  ;;  %572 = vmatprep.subr.bf16.mxu1 %v1064_v24  ;;  %vm1416_vm4 = vmpackc.low %vm293_vm3, %vm290_vm2  ;;  %s268_s8 = scalar_lea.vmem [#allocation2], %s904_s17  ;;  %s1455_s13 = scalar_lea.hbm %s1508_s6, %s967_s15 }
  0x22   : > { %408 = vmatprep.subr.bf16.mxu0 %v1042_v15  ;;  %s822_s28 = sshll.u32 %s268_s8, 4  ;;  %s808_s14 = scalar_lea.sflag [#allocation3], %s266_s18  ;;  %s1457_s28 = int_to_ptr.vmem [resolvable:$true] %s822_s28 }
  0x23   : > { %s1100_s24 = scalar_lea.vmem %s1457_s28, 128  ;;  %s1181_s16 = smov [#allocation2]  }
  0x24   : > { %573 = vmatpush1.bf16.msra.mxu1 %v1066_v26  ;;  %p1101_p12 = scmp.ne.s32.totalorder %s1457_s28, %s1100_s24  ;;  %s1104_s17 = sshll.u32 %s1181_s16, 4  ;;  %s1105_s17 = int_to_ptr.vmem [resolvable:$false] %s1104_s17 }
  0x25   : > { %409 = vmatpush1.bf16.msra.mxu0 %v1044_v17  ;;  %574 = vmatprep.subr.bf16.mxu1 %v1067_v27  ;;  %s1106_s19 = scalar_lea.vmem %s1105_s17, 256  ;;  %p1107_p1 = scmp.lt.s32.totalorder %s1457_s28, %s1105_s17 }
  0x26   : > { %410 = vmatprep.subr.bf16.mxu0 %v1045_v18  ;;  %p1102_p13 = pnand %p1101_p12, %p1257_p4  ;;  %p1108_p2 = scmp.lt.s32.totalorder %s1106_s19, %s1100_s24 }
  0x28   : > { %575 = vmatpush1.bf16.msra.mxu1 %v1069_v29  ;;  %p1103_p0 = pneg %p1102_p13  ;;  %p1109_p3 = por %p1108_p2, %p1107_p1 }
  0x29   : > { %411 = vmatpush1.bf16.msra.mxu0 %v1047_v21  ;;  %576 = vmatprep.subr.bf16.mxu1 %v1070_v30 }
  0x2a   : > { %412 = vmatprep.subr.bf16.mxu0 %v1048_v23  ;;  %p1110_p5 = pnand %p1109_p3, %p1103_p0 }
  0x2c   : > { %577 = vmatpush1.bf16.msra.mxu1 %v1072_v31 }
  0x2d   : > { %413 = vmatpush1.bf16.msra.mxu0 %v1050_v25  ;;  %578 = vmatprep.subr.bf16.mxu1 %v1073_v32 }
  0x2e   : > { %724 = vmatprep.subr.bf16.mxu0 %v1078_v35 }
  0x30   : > { %431 = vmatmul.mubr.bf16.vlgmr.msra.gmra.mrb[0].mxu0 %v1051_v28  ;;  %579 = vmatpush1.bf16.msra.mxu1 %v1075_v33 }
  0x31   : > { %756 = vmatprep.mubr.bf16.mxu0 %v1180_v2  ;;  %725 = vmatpush1.bf16.msra.mxu0 %v1076_v34 }
  0x32   : > { %726 = vmatprep.subr.bf16.mxu0 %v1081_v36  ;;  %v964_v36 = vld [vmem:[%s1506_s4] ss:$0 sm:$0xff] }
  0x35   : > { %727 = vmatpush1.bf16.msra.mxu0 %v1079_v37 }
  0x36   : > { %728 = vmatprep.subr.bf16.mxu0 %v1084_v38 }
  0x39   : > { %729 = vmatpush1.bf16.msra.mxu0 %v1082_v39  ;;  %v965_v39 = vld [vmem:[%s1507_s5] ss:$0 sm:$0xff] }
  0x3a   : > { %730 = vmatprep.subr.bf16.mxu0 %v1087_v40 }
  0x3d   : > { %731 = vmatpush1.bf16.msra.mxu0 %v1085_v41 }
  0x3e   : > { %732 = vmatprep.subr.bf16.mxu0 %v1090_v42 }
  0x41   : > { %733 = vmatpush1.bf16.msra.mxu0 %v1088_v43 }
  0x42   : > { %734 = vmatprep.subr.bf16.mxu0 %v1093_v44 }
  0x45   : > { %735 = vmatpush1.bf16.msra.mxu0 %v1091_v45 }
  0x46   : > { %736 = vmatprep.subr.bf16.mxu0 %v1096_v3 }
  0x49   : > { %737 = vmatpush1.bf16.msra.mxu0 %v1094_v4 }
  0x4a   : > { %738 = vmatprep.subr.bf16.mxu0 %v1099_v5 }
  0x4d   : > { %739 = vmatpush1.bf16.msra.mxu0 %v1097_v6 }
 0x103   : > { %v432_v49 = vpop.f32.mrb[0].mxu0 }
 0x104   : > { %v434_v50 = vpop.f32.mrb[1].mxu0  ;;  %v444_v53 = vrot.slane %v432_v49, 7 }
 0x105   : > { %v436_v54 = vpop.f32.mrb[2].mxu0  ;;  %v453_v57 = vrot.slane %v434_v50, 1 }
 0x106   : > { %v445_v55 = vrot.slane %v436_v54, 7  ;;  %v438_v56 = vpop.f32.mrb[3].mxu0  ;;  %v449_v60 = vsel %vm443_vm0, 0.0, %v444_v53 }
 0x107   : > { %v454_v58 = vrot.slane %v438_v56, 1 }
 0x108   : > { %v446_v59 = vsel %vm443_vm0, %v444_v53, %v445_v55 }
 0x109   : > { %v455_v61 = vsel %vm452_vm1, %v453_v57, %v454_v58  ;;  %v458_v62 = vsel %vm452_vm1, %v454_v58, 0.0 }
 0x10a   : > { %v459_v63 = vadd.f32 %v455_v61, %v449_v60  ;;  %v460_v0 = vadd.f32 %v458_v62, %v446_v59 }
 0x10c   : > { %v943_v2 = vpack.c.bf16 %v460_v0, %v459_v63 }
 0x10e   : > { %944 = vmatmul.mubr.msk.bf16.vlgmr.msra.gmra.mrb[0].mxu1 %vm1416_vm4, %v943_v2 }
 0x1e1   : > { %v598_v7 = vpop.f32.mrb[0].mxu1 }
 0x1e2   : > { %v600_v8 = vpop.f32.mrb[1].mxu1  ;;  %v609_v9 = vrot.slane %v598_v7, 7 }
 0x1e3   : > { %v602_v10 = vpop.f32.mrb[2].mxu1  ;;  %v617_v13 = vrot.slane %v600_v8, 1 }
 0x1e4   : > { %v610_v11 = vrot.slane %v602_v10, 7  ;;  %v604_v12 = vpop.f32.mrb[3].mxu1  ;;  %v614_v16 = vsel %vm443_vm0, 0.0, %v609_v9 }
 0x1e5   : > { %v618_v14 = vrot.slane %v604_v12, 1 }
 0x1e6   : > { %v611_v15 = vsel %vm443_vm0, %v609_v9, %v610_v11 }
 0x1e7   : > { %v619_v17 = vsel %vm452_vm1, %v617_v13, %v618_v14  ;;  %v622_v18 = vsel %vm452_vm1, %v618_v14, 0.0 }
 0x1e8   : > { %v623_v19 = vadd.f32 %v619_v17, %v614_v16  ;;  %v624_v20 = vadd.f32 %v622_v18, %v611_v15 }
 0x1ea   : > { %v962_v21 = vpack.c.bf16 %v624_v20, %v623_v19 }
 0x1ec   : > { %963 = vmatmul.mubr.msk.bf16.vlgmr.msra.gmra.mrb[4].mxu0 %vm1416_vm4, %v962_v21 }
 0x2bf   : > { %v758_v22 = vpop.f32.mrb[4].mxu0 }
 0x2c0   : > { %v760_v23 = vpop.f32.mrb[5].mxu0  ;;  %v769_v24 = vrot.slane %v758_v22, 7 }
 0x2c1   : > { %v762_v25 = vpop.f32.mrb[6].mxu0  ;;  %v777_v28 = vrot.slane %v760_v23, 1 }
 0x2c2   : > { %v770_v26 = vrot.slane %v762_v25, 7  ;;  %v764_v27 = vpop.f32.mrb[7].mxu0  ;;  %v774_v31 = vsel %vm443_vm0, 0.0, %v769_v24 }
 0x2c3   : > { %v778_v29 = vrot.slane %v764_v27, 1 }
 0x2c4   : > { %v771_v30 = vsel %vm443_vm0, %v769_v24, %v770_v26 }
 0x2c5   : > { %v779_v32 = vsel %vm452_vm1, %v777_v28, %v778_v29  ;;  %v782_v33 = vsel %vm452_vm1, %v778_v29, 0.0 }
 0x2c6   : > { %v783_v34 = vadd.f32 %v779_v32, %v774_v31  ;;  %v784_v35 = vadd.f32 %v782_v33, %v771_v30 }
 0x2c8   : > { %v785_v37 = vmax.f32 %v783_v34, 0.0  ;;  %v786_v38 = vmax.f32 %v784_v35, 0.0 }
 0x2ca   : > { %v794_v40 = vmul.f32 %v964_v36, %v785_v37  ;;  %v795_v41 = vmul.f32 %v964_v36, %v786_v38 }
 0x2cc   : > { %v804_v42 = vadd.f32 %v965_v39, %v795_v41  ;;  %v803_v43 = vadd.f32 %v965_v39, %v794_v40 }
 0x2ce   : > { %805 = vst [vmem:[%s268_s8 - $0x4] sm:$0xf0] %v803_v43  ;;  %806 = vst [vmem:[%s268_s8 + $0x4] sm:$0xf] %v804_v42 }
 0x2cf   : > { %1113 = shalt.err (!%p1110_p5)
}
 0x2d0   : > { %s1114_s18 = scalar_lea.hbm %s1455_s13, 128  ;;  %s1118_s30 = scalar_lea.hbm %s1508_s6, 256 }
 0x2d1   : > { %p1115_p6 = scmp.ne.s32.totalorder %s1455_s13, %s1114_s18  ;;  %p1119_p10 = scmp.lt.u32.totalorder %s1455_s13, %s1508_s6 }
 0x2d2   : > { %p1120_p11 = scmp.lt.u32.totalorder %s1118_s30, %s1114_s18  ;;  %p1122_p13 = scmp.lt.u32.totalorder %s1114_s18, %s1455_s13 }
 0x2d3   : > { %p1116_p7 = pnand %p1115_p6, %p1257_p4 }
 0x2d4   : > { %p1121_p12 = por %p1120_p11, %p1119_p10 }
 0x2d5   : > { %p1117_p9 = pneg %p1116_p7 }
 0x2d6   : > { %p1123_p0 = por %p1122_p13, %p1121_p12 }
 0x2d8   : > { %p1124_p1 = pnand %p1123_p0, %p1117_p9 }
 0x2da   : > { %1127 = shalt.err (!%p1124_p1)
}
 0x2db   : > { %971 = dma.vmem_to_hbm [thread:$0]  (%p1257_p4), %s1457_s28, 128, %s1455_s13, %s808_s14  }
 0x2dc PF: > { %p977_p2 = scmp.ge.s32.totalorder %s1178_s26, 2  ;;  %s834_s11 = sand.u32 1, %s1158_s21  }
 0x2dd   : > { %s835_s12 = scalar_lea.sflag [#allocation3], %s834_s11 }
 0x2de   : > { %p974_p3 = pnand %p977_p2, %p1264_p8 }
 0x2e0   : > { %1153 = dma.done.wait (!%p974_p3), %s835_s12, 128  }
 0x2e1   : > { %1155 = vsyncadd (!%p974_p3), %s835_s12, 4294967168  ;;  %s19_s26 = sadd.s32 1, %s1178_s26   ;;  %s1513_s21 = smov %s1162_s22 }
 0x2e2   : > { %p16_p5 = scmp.ge.s32.totalorder %s19_s26, 4   ;;  %s1514_s22 = smov %s1166_s23 }
 0x2e3   : > { %s1515_s23 = smov %s1270_s10  ;;  %s1516_s24 = smov %s1174_s25 }
 0x2e4   : > { %s1517_s25 = smov %s1519_s29  ;;  %18 = sbr.rel (!%p16_p5) target bundleno = 4 (0x4), region = 79 }
 0x2eb   :  { %840 = vsyncpa [#allocation3], 1 }
 0x2ec   :  { %842 = vsyncpa [#allocation3 + $0x1], 1 }

</bundles_post_ra>
